<compile_context>
chip_gen: v7x
topology: tpu7x:2x2x1
jax: 0.10.0
libtpu: 0.0.40
codegen_flags: <defaults>
</compile_context>

<pallas_src>
import functools

import jax
import jax.numpy as jnp
from jax.experimental import pallas as pl
from jax.experimental.pallas import tpu as pltpu


def _round_up(v, m):
    return (v + m - 1) // m * m


def _vmem_budget_bytes():
    """Generation-aware VMEM budget with ~20% headroom for Mosaic scratch."""
    cap = 64 << 20  # conservative fallback (v7x per-core VMEM)
    try:
        info = pltpu.get_tpu_info()
        cap = int(getattr(info, "vmem_capacity_bytes", cap) or cap)
    except Exception:
        pass
    return int(cap * 0.8)


def _resident_vmem_estimate(n, in_ch, f_pad):
    return (n * n * 2                       # adj scratch (bf16)
            + n * in_ch * 4                 # x
            + in_ch * f_pad * 2 + f_pad * 4  # w (bf16) + b
            + n * f_pad * 4                 # output block
            + 3 * n * f_pad * 4)            # live h / alpha*h / z intermediates


def _tiled_vmem_estimate(n, in_ch, f_pad, t):
    return (2 * t * n * 2                   # double-buffered adj row block (bf16)
            + 2 * t * in_ch * 4             # double-buffered x row block
            + in_ch * f_pad * 2 + f_pad * 4  # w (bf16) + b
            + 2 * t * f_pad * 4             # double-buffered output block
            + 2 * n * f_pad * 2             # z ping-pong scratch (bf16)
            + n * f_pad * 4                 # alpha*h scratch (f32)
            + 2 * t * f_pad * 4)            # live intermediates


# --------------------------------------------------------------------------
# Kernel 1: whole (bf16) adjacency resident in VMEM for all K steps (small N).
# The HBM->VMEM adjacency copy is issued manually and overlapped with lin1.
# --------------------------------------------------------------------------
def _appnp_kernel_resident(adj_hbm_ref, x_ref, w_ref, b_ref, out_ref,
                           adj_vmem, dma_sem, *, K, alpha):
    # adj_hbm_ref: [N, N]  bf16 in HBM, already scaled by (1 - alpha)
    # x_ref:       [N, IN] f32
    # w_ref:       [IN, F] bf16   (F = lane-dense padded out_channels)
    # b_ref:       [1, F]  f32
    # out_ref:     [N, F]  f32
    cp = pltpu.make_async_copy(adj_hbm_ref, adj_vmem, dma_sem)
    cp.start()                                    # adjacency DMA in flight during lin1

    h = jnp.dot(x_ref[...].astype(jnp.bfloat16), w_ref[...],
                preferred_element_type=jnp.float32) + b_ref[...]
    h = jnp.maximum(h, 0.0)                       # lin1 + ReLU (dropout = identity, eval)
    ah = alpha * h                                # hoisted out of the K loop
    z = h

    cp.wait()
    adj = adj_vmem[...]                           # bf16, (1-alpha) folded in
    for _ in range(K):                            # K is a small static constant
        z = jnp.dot(adj, z.astype(jnp.bfloat16),
                    preferred_element_type=jnp.float32) + ah
    out_ref[...] = z.astype(out_ref.dtype)


# --------------------------------------------------------------------------
# Kernel 2: row-tiled grid, adjacency streamed from HBM, z resident in VMEM.
# grid = (K + 1, N // TM):  k = 0 does lin1+ReLU init, k = 1..K propagate.
# Output is only written at k == K (index maps collapse otherwise -> no dead DMA).
# --------------------------------------------------------------------------
def _appnp_kernel_tiled(adj_ref, x_ref, w_ref, b_ref, out_ref, z_ref, ah_ref,
                        *, K, alpha, row_tile):
    k = pl.program_id(0)                          # step axis (outer, arbitrary)
    i = pl.program_id(1)                          # row-block axis (inner)
    row0 = pl.multiple_of(i * row_tile, row_tile)

    @pl.when(k == 0)
    def _init():
        h = jnp.dot(x_ref[...].astype(jnp.bfloat16), w_ref[...],
                    preferred_element_type=jnp.float32) + b_ref[...]
        h = jnp.maximum(h, 0.0)
        z_ref[0, pl.ds(row0, row_tile), :] = h.astype(z_ref.dtype)
        ah_ref[pl.ds(row0, row_tile), :] = alpha * h

    @pl.when(k > 0)
    def _propagate():
        src = (k - 1) % 2                         # ping-pong so all row blocks of a
        dst = k % 2                               # step read a consistent z
        z_new = jnp.dot(adj_ref[...], z_ref[src],
                        preferred_element_type=jnp.float32) \
            + ah_ref[pl.ds(row0, row_tile), :]
        z_ref[dst, pl.ds(row0, row_tile), :] = z_new.astype(z_ref.dtype)

        @pl.when(k == K)                          # only the final step writes HBM
        def _write():
            out_ref[...] = z_new.astype(out_ref.dtype)


# --------------------------------------------------------------------------
# Wrappers
# --------------------------------------------------------------------------
def _pad_params(weight_t, bias):
    out_ch = weight_t.shape[1]
    f_pad = max(128, _round_up(out_ch, 128))
    pad = f_pad - out_ch
    w = jnp.pad(weight_t.astype(jnp.float32), ((0, 0), (0, pad))).astype(jnp.bfloat16)
    b = jnp.pad(bias.astype(jnp.float32).reshape(1, -1), ((0, 0), (0, pad)))
    return w, b, f_pad


def prepare_scaled_adjacency(adj_norm, alpha):
    """Fold the (1 - alpha) APPNP scaling into the adjacency once; store bf16.
    Cache/reuse this across forward calls when the graph is static."""
    return ((1.0 - alpha) * adj_norm).astype(jnp.bfloat16)


def _forward_resident(x, adj_scaled, w_pad, b_pad, *, K, alpha, vmem_budget):
    n, in_ch = x.shape
    f_pad = w_pad.shape[1]
    est = _resident_vmem_estimate(n, in_ch, f_pad)
    vmem_limit = int(min(max(est * 3 // 2, 4 << 20), vmem_budget))
    kernel = functools.partial(_appnp_kernel_resident, K=K, alpha=alpha)
    return pl.pallas_call(
        kernel,
        out_shape=jax.ShapeDtypeStruct((n, f_pad), jnp.float32),
        in_specs=[
            pl.BlockSpec(memory_space=pl.ANY),                   # adj stays in HBM
            pl.BlockSpec(memory_space=pltpu.MemorySpace.VMEM),   # x
            pl.BlockSpec(memory_space=pltpu.MemorySpace.VMEM),   # w
            pl.BlockSpec(memory_space=pltpu.MemorySpace.VMEM),   # b
        ],
        out_specs=pl.BlockSpec(memory_space=pltpu.MemorySpace.VMEM),
        scratch_shapes=[
            pltpu.VMEM((n, n), jnp.bfloat16),                    # adjacency landing buffer
            pltpu.SemaphoreType.DMA,                             # its completion semaphore
        ],
        compiler_params=pltpu.CompilerParams(vmem_limit_bytes=vmem_limit),
    )(adj_scaled, x, w_pad, b_pad)


def _forward_tiled(x, adj_scaled, w_pad, b_pad, *, K, alpha, row_tile, vmem_budget):
    n, in_ch = x.shape
    f_pad = w_pad.shape[1]
    assert K >= 1, "tiled path needs at least one propagation step"
    assert n % row_tile == 0, "N must be a multiple of row_tile for the tiled path"
    assert row_tile % 8 == 0, "row_tile must be a multiple of 8"
    nb = n // row_tile
    kernel = functools.partial(_appnp_kernel_tiled, K=K, alpha=alpha, row_tile=row_tile)
    est = _tiled_vmem_estimate(n, in_ch, f_pad, row_tile)
    vmem_limit = int(min(max(2 * est, 8 << 20), vmem_budget))

    # Index maps collapse to block 0 on grid steps that do not consume the operand,
    # so Pallas' consecutive-same-index dedup skips the fetch / writeback:
    #   adj : only read at k > 0
    #   x   : only read at k == 0
    #   out : only written at k == K
    adj_map = lambda k, i: (jnp.where(k > 0, i, 0), 0)
    x_map = lambda k, i: (jnp.where(k == 0, i, 0), 0)
    out_map = lambda k, i: (jnp.where(k == K, i, 0), 0)

    return pl.pallas_call(
        kernel,
        out_shape=jax.ShapeDtypeStruct((n, f_pad), jnp.float32),
        grid_spec=pltpu.PrefetchScalarGridSpec(
            num_scalar_prefetch=0,
            grid=(K + 1, nb),                                       # K outer, rows inner
            in_specs=[
                pl.BlockSpec((row_tile, n), adj_map),               # adj rows (streamed)
                pl.BlockSpec((row_tile, in_ch), x_map),             # x rows
                pl.BlockSpec((in_ch, f_pad), lambda k, i: (0, 0)),  # weight (resident)
                pl.BlockSpec((1, f_pad), lambda k, i: (0, 0)),      # bias
            ],
            out_specs=pl.BlockSpec((row_tile, f_pad), out_map),
            scratch_shapes=[
                pltpu.VMEM((2, n, f_pad), jnp.bfloat16),   # z ping-pong across steps
                pltpu.VMEM((n, f_pad), jnp.float32),       # alpha * h
            ],
        ),
        compiler_params=pltpu.CompilerParams(
            # z ping-pong in per-core VMEM requires strictly sequential execution.
            # TODO(synk): v7x megacore split needs shared-VMEM z + pltpu.core_barrier.
            dimension_semantics=("arbitrary", "arbitrary"),
            vmem_limit_bytes=vmem_limit,
        ),
    )(adj_scaled, x, w_pad, b_pad)


def appnp_net_forward(x, adj_norm, weight_t, bias, *, K, alpha,
                      row_tile=None, adj_scaled=None):
    """Net.forward (eval mode). x: [N,in], adj_norm: [N,N] sym-normalized adjacency
    with self loops, weight_t: [in,out] (torch Linear weight transposed), bias: [1,out].
    Pass adj_scaled=prepare_scaled_adjacency(adj_norm, alpha) to reuse it across calls."""
    n, in_ch = x.shape
    out_ch = weight_t.shape[1]
    w_pad, b_pad, f_pad = _pad_params(weight_t, bias)
    x = x.astype(jnp.float32)
    if adj_scaled is None:
        adj_scaled = prepare_scaled_adjacency(adj_norm, alpha)

    budget = _vmem_budget_bytes()
    resident_est = _resident_vmem_estimate(n, in_ch, f_pad)

    if K == 0 or (row_tile is None and resident_est <= budget):
        out = _forward_resident(x, adj_scaled, w_pad, b_pad,
                                K=K, alpha=alpha, vmem_budget=budget)
    else:
        if row_tile is None:
            candidates = [t for t in (1024, 512, 256, 128, 64, 32, 16, 8) if n % t == 0]
            if not candidates:
                raise ValueError("N must be a multiple of 8 for the tiled path")
            # Largest row tile whose working set fits the generation-aware VMEM budget.
            row_tile = next((t for t in candidates
                             if _tiled_vmem_estimate(n, in_ch, f_pad, t) <= budget),
                            candidates[-1])
        out = _forward_tiled(x, adj_scaled, w_pad, b_pad,
                             K=K, alpha=alpha, row_tile=row_tile, vmem_budget=budget)
    return out[:, :out_ch]


def gcn_norm_dense(edge_index, num_nodes):
    """Dense D^{-1/2}(A + I)D^{-1/2} from (2, E) edge_index (plain-JAX glue).
    TODO(synk): for large sparse graphs replace dense adj with a scalar-prefetch SpMM."""
    src, dst = edge_index[0], edge_index[1]
    a = jnp.zeros((num_nodes, num_nodes), jnp.float32)
    # message flows src -> dst: (A @ x)[dst] aggregates x[src]; .add so duplicate
    # edges accumulate like PyG's scatter-add gcn_norm.
    a = a.at[dst, src].add(1.0)
    a = a + jnp.eye(num_nodes, dtype=jnp.float32)          # self loops
    deg = jnp.sum(a, axis=1)
    d_inv_sqrt = jax.lax.rsqrt(jnp.maximum(deg, 1e-12))
    return a * d_inv_sqrt[:, None] * d_inv_sqrt[None, :]


if __name__ == "__main__":
    IN_CH, OUT_CH, K, ALPHA = 32, 64, 4, 0.1
    # args.dropout is only active in training; eval forward -> identity.

    key = jax.random.PRNGKey(0)
    k_x1, k_x2, k_w, k_b = jax.random.split(key, 4)

    bound = 1.0 / jnp.sqrt(jnp.float32(IN_CH))
    weight_t = jax.random.uniform(k_w, (IN_CH, OUT_CH), jnp.float32, -bound, bound)
    bias = jax.random.uniform(k_b, (1, OUT_CH), jnp.float32, -bound, bound)

    def make_graph(n, kx):
        x = jax.random.normal(kx, (n, IN_CH), dtype=jnp.float32)
        idx = jnp.arange(n)
        src = jnp.concatenate([idx, idx, idx])
        dst = jnp.concatenate([(idx + 1) % n, (idx - 1) % n, (idx + 7) % n])
        return x, gcn_norm_dense(jnp.stack([src, dst], axis=0), n)

    def reference(x, adj):
        h = jnp.maximum(x @ weight_t + bias, 0.0)
        z = h
        for _ in range(K):
            z = (1.0 - ALPHA) * (adj @ z) + ALPHA * h
        return z

    # 1) Small graph -> adjacency-resident kernel (adj DMA overlapped with lin1).
    x1, adj1 = make_graph(128, k_x1)
    adj1_scaled = prepare_scaled_adjacency(adj1, ALPHA)    # precomputed once, reusable
    out1 = jax.block_until_ready(
        appnp_net_forward(x1, adj1, weight_t, bias, K=K, alpha=ALPHA,
                          adj_scaled=adj1_scaled))
    ref1 = reference(x1, adj1)
    assert out1.shape == (128, OUT_CH)
    assert jnp.allclose(out1, ref1, atol=5e-2, rtol=5e-2), \
        float(jnp.max(jnp.abs(out1 - ref1)))

    # 2) Larger graph forced through the row-tiled, adjacency-streaming grid.
    x2, adj2 = make_graph(512, k_x2)
    adj2_scaled = prepare_scaled_adjacency(adj2, ALPHA)
    out2 = jax.block_until_ready(
        appnp_net_forward(x2, adj2, weight_t, bias, K=K, alpha=ALPHA,
                          row_tile=256, adj_scaled=adj2_scaled))
    ref2 = reference(x2, adj2)
    assert out2.shape == (512, OUT_CH)
    assert jnp.allclose(out2, ref2, atol=5e-2, rtol=5e-2), \
        float(jnp.max(jnp.abs(out2 - ref2)))

    print("KERNEL_OK")
</pallas_src>

<mosaic_0001>
module attributes {stable_mosaic.version = 11 : i64} {
  func.func @_appnp_kernel_resident(%arg0: memref<128x128xbf16, #tpu.memory_space<any>>, %arg1: memref<128x32xf32, #tpu.memory_space<vmem>>, %arg2: memref<32x128xbf16, #tpu.memory_space<vmem>>, %arg3: memref<1x128xf32, #tpu.memory_space<vmem>>, %arg4: memref<128x128xf32, #tpu.memory_space<vmem>>, %arg5: memref<128x128xbf16, #tpu.memory_space<vmem>>, %arg6: memref<!tpu.dma_semaphore, #tpu.memory_space<semaphore_mem>>) attributes {dimension_semantics = [], scalar_prefetch = 0 : i64, scratch_operands = 2 : i64, tpu.core_type = #tpu.core_type<tc>} {
    tpu.enqueue_dma source(%arg0 : memref<128x128xbf16, #tpu.memory_space<any>>) target(%arg5 : memref<128x128xbf16, #tpu.memory_space<vmem>>) target_semaphore(%arg6 : memref<!tpu.dma_semaphore, #tpu.memory_space<semaphore_mem>>)
    %c0 = arith.constant 0 : index
    %c0_0 = arith.constant 0 : index
    %0 = vector.load %arg1[%c0, %c0_0] : memref<128x32xf32, #tpu.memory_space<vmem>>, vector<128x32xf32>
    %1 = arith.truncf %0 : vector<128x32xf32> to vector<128x32xbf16>
    %c0_1 = arith.constant 0 : index
    %c0_2 = arith.constant 0 : index
    %2 = vector.load %arg2[%c0_1, %c0_2] : memref<32x128xbf16, #tpu.memory_space<vmem>>, vector<32x128xbf16>
    %cst = arith.constant dense<0.000000e+00> : vector<128x128xf32>
    %3 = tpu.matmul %1, %2, %cst {dimension_numbers = #tpu.dot_dimension_numbers<[1], [0], [0], [1], [0, 0, 1, 1], [], []>} : vector<128x32xbf16>, vector<32x128xbf16>, vector<128x128xf32> -> vector<128x128xf32>
    %c0_3 = arith.constant 0 : index
    %c0_4 = arith.constant 0 : index
    %4 = vector.load %arg3[%c0_3, %c0_4] : memref<1x128xf32, #tpu.memory_space<vmem>>, vector<1x128xf32>
    %5 = vector.broadcast %4 : vector<1x128xf32> to vector<128x128xf32>
    %6 = arith.addf %3, %5 : vector<128x128xf32>
    %cst_5 = arith.constant 0.000000e+00 : f32
    %7 = vector.broadcast %cst_5 : f32 to vector<128x128xf32>
    %8 = arith.maximumf %6, %7 : vector<128x128xf32>
    %cst_6 = arith.constant 1.000000e-01 : f32
    %9 = vector.broadcast %cst_6 : f32 to vector<128x128xf32>
    %10 = arith.mulf %9, %8 : vector<128x128xf32>
    tpu.wait_dma2 semaphore(%arg6 : memref<!tpu.dma_semaphore, #tpu.memory_space<semaphore_mem>>) src(%arg0 : memref<128x128xbf16, #tpu.memory_space<any>>) dst(%arg5 : memref<128x128xbf16, #tpu.memory_space<vmem>>)
    %c0_7 = arith.constant 0 : index
    %c0_8 = arith.constant 0 : index
    %11 = vector.load %arg5[%c0_7, %c0_8] : memref<128x128xbf16, #tpu.memory_space<vmem>>, vector<128x128xbf16>
    %12 = arith.truncf %8 : vector<128x128xf32> to vector<128x128xbf16>
    %cst_9 = arith.constant dense<0.000000e+00> : vector<128x128xf32>
    %13 = tpu.matmul %11, %12, %cst_9 {dimension_numbers = #tpu.dot_dimension_numbers<[1], [0], [0], [1], [0, 0, 1, 1], [], []>} : vector<128x128xbf16>, vector<128x128xbf16>, vector<128x128xf32> -> vector<128x128xf32>
    %14 = arith.addf %13, %10 : vector<128x128xf32>
    %15 = arith.truncf %14 : vector<128x128xf32> to vector<128x128xbf16>
    %cst_10 = arith.constant dense<0.000000e+00> : vector<128x128xf32>
    %16 = tpu.matmul %11, %15, %cst_10 {dimension_numbers = #tpu.dot_dimension_numbers<[1], [0], [0], [1], [0, 0, 1, 1], [], []>} : vector<128x128xbf16>, vector<128x128xbf16>, vector<128x128xf32> -> vector<128x128xf32>
    %17 = arith.addf %16, %10 : vector<128x128xf32>
    %18 = arith.truncf %17 : vector<128x128xf32> to vector<128x128xbf16>
    %cst_11 = arith.constant dense<0.000000e+00> : vector<128x128xf32>
    %19 = tpu.matmul %11, %18, %cst_11 {dimension_numbers = #tpu.dot_dimension_numbers<[1], [0], [0], [1], [0, 0, 1, 1], [], []>} : vector<128x128xbf16>, vector<128x128xbf16>, vector<128x128xf32> -> vector<128x128xf32>
    %20 = arith.addf %19, %10 : vector<128x128xf32>
    %21 = arith.truncf %20 : vector<128x128xf32> to vector<128x128xbf16>
    %cst_12 = arith.constant dense<0.000000e+00> : vector<128x128xf32>
    %22 = tpu.matmul %11, %21, %cst_12 {dimension_numbers = #tpu.dot_dimension_numbers<[1], [0], [0], [1], [0, 0, 1, 1], [], []>} : vector<128x128xbf16>, vector<128x128xbf16>, vector<128x128xf32> -> vector<128x128xf32>
    %23 = arith.addf %22, %10 : vector<128x128xf32>
    %c0_13 = arith.constant 0 : index
    %c0_14 = arith.constant 0 : index
    %24 = vector.load %arg4[%c0_13, %c0_14] : memref<128x128xf32, #tpu.memory_space<vmem>>, vector<128x128xf32>
    tpu.vector_store %arg4[%c0_13, %c0_14], %23 {strides = array<i32>} : memref<128x128xf32, #tpu.memory_space<vmem>>, vector<128x128xf32>,
    return
  }
}

</mosaic_0001>

<bundles_post_ra>
// kernel: tpu_custom_call.1
= control target key start
LH: loop header
LB: loop body
LE: loop exit
PB: predicated region body
PF: predicated region fallthrough
CT: control target
= control target key end

     0   :  { %9 = vsyncpa [#allocation5], 0  ;;  %s1293_s0 = inlined_call_operand.vmem [shape: bf16[128,128], index: 0, kind: input, shape index: {}]   ;;  %s1294_s1 = inlined_call_operand.vmem [shape: f32[128,32], index: 1, kind: input, shape index: {}]   ;;  %s1295_s2 = inlined_call_operand.vmem [shape: bf16[32,128], index: 2, kind: input, shape index: {}]   ;;  %s1296_s3 = inlined_call_operand.vmem [shape: f32[1,128], index: 3, kind: input, shape index: {}]   ;;  %s1297_s4 = inlined_call_operand.hbm [shape: f32[128,128], index: 4, kind: output, shape index: {}]  }
   0x1   :  { %v1048_v0 = vld [vmem:[%s1293_s0] sm:$0xff]  ;;  %v1053_v1 = vld [vmem:[%s1293_s0 + $0x8] sm:$0xff]  ;;  %v1058_v2 = vld [vmem:[%s1293_s0 + $0x10] sm:$0xff] }
   0x2   :  { %v1063_v3 = vld [vmem:[%s1293_s0 + $0x18] sm:$0xff]  ;;  %v1068_v4 = vld [vmem:[%s1293_s0 + $0x20] sm:$0xff]  ;;  %v1073_v5 = vld [vmem:[%s1293_s0 + $0x28] sm:$0xff] }
   0x3   :  { %v1078_v6 = vld [vmem:[%s1293_s0 + $0x30] sm:$0xff]  ;;  %v1083_v7 = vld [vmem:[%s1293_s0 + $0x38] sm:$0xff] }
   0x4   :  { %72 = vsyncadd [#allocation3], 1024  ;;  %v989_v8 = vld [vmem:[%s1295_s2] sm:$0xff]   ;;  %v990_v9 = vld [vmem:[%s1295_s2 + $0x8] sm:$0xff]   ;;  %vm120_vm0 = vcmask 261120   ;;  %874 = vmatprep.mubr.bf16.mxu1 %v1048_v0 }
   0x5   :  { %v73_v10 = vld [vmem:[%s1294_s1] sm:$0xff]  ;;  %v74_v11 = vld [vmem:[%s1294_s1 + $0x8] sm:$0xff]  ;;  %838 = vmatprep.subr.bf16.mxu0 %v989_v8  ;;  %v75_v13 = vld [vmem:[%s1294_s1 + $0x10] sm:$0xff] }
   0x6   :  { %v89_v12 = vpack.c.bf16 %v74_v11, %v73_v10  ;;  %839 = vmatpush3.bf16.msra.mxu0 %v989_v8  ;;  %v76_v14 = vld [vmem:[%s1294_s1 + $0x18] sm:$0xff]  ;;  %v77_v15 = vld [vmem:[%s1294_s1 + $0x20] sm:$0xff]  ;;  %v78_v16 = vld [vmem:[%s1294_s1 + $0x28] sm:$0xff] }
   0x7   :  { %840 = vmatprep.subr.bf16.mxu0 %v990_v9  ;;  %v90_v17 = vpack.c.bf16 %v76_v14, %v75_v13  ;;  %v91_v18 = vpack.c.bf16 %v78_v16, %v77_v15  ;;  %v79_v19 = vld [vmem:[%s1294_s1 + $0x30] sm:$0xff]  ;;  %v80_v20 = vld [vmem:[%s1294_s1 + $0x38] sm:$0xff]  ;;  %v81_v21 = vld [vmem:[%s1294_s1 + $0x40] sm:$0xff] }
   0x8   :  { %842 = vmatprep.mubr.msk.bf16.mxu0 %vm120_vm0, %v89_v12  ;;  %v82_v22 = vld [vmem:[%s1294_s1 + $0x48] sm:$0xff]  ;;  %v92_v23 = vpack.c.bf16 %v80_v20, %v79_v19  ;;  %v83_v25 = vld [vmem:[%s1294_s1 + $0x50] sm:$0xff]  ;;  %v84_v26 = vld [vmem:[%s1294_s1 + $0x58] sm:$0xff] }
   0x9   :  { %v93_v24 = vpack.c.bf16 %v82_v22, %v81_v21  ;;  %v85_v27 = vld [vmem:[%s1294_s1 + $0x60] sm:$0xff]  ;;  %v86_v28 = vld [vmem:[%s1294_s1 + $0x68] sm:$0xff]  ;;  %v94_v29 = vpack.c.bf16 %v84_v26, %v83_v25  ;;  %v87_v31 = vld [vmem:[%s1294_s1 + $0x70] sm:$0xff] }
   0xa   :  { %841 = vmatpush3.bf16.msra.mxu0 %v990_v9  ;;  %v95_v30 = vpack.c.bf16 %v86_v28, %v85_v27  ;;  %v88_v32 = vld [vmem:[%s1294_s1 + $0x78] sm:$0xff]  ;;  %v752_v34 = vld [vmem:[%s1296_s3] ss:$0 sm:$0xff] }
   0xb   :  { %v96_v33 = vpack.c.bf16 %v88_v32, %v87_v31 }
   0xd   :  { %843 = vmatmul.mubr.msk.bf16.vlgmr.msra.gmra.mrb[0].mxu0 %vm120_vm0, %v90_v17 }
   0xe   :  { %846 = vmatprep.mubr.msk.bf16.mxu0 %vm120_vm0, %v91_v18 }
  0x15   :  { %847 = vmatmul.mubr.msk.bf16.gmra.mrb[4].mxu0 %vm120_vm0, %v92_v23 }
  0x16   :  { %850 = vmatprep.mubr.msk.bf16.mxu0 %vm120_vm0, %v93_v24 }
  0x1d   :  { %851 = vmatmul.mubr.msk.bf16.gmra.mrb[8].mxu0 %vm120_vm0, %v94_v29 }
  0x1e   :  { %854 = vmatprep.mubr.msk.bf16.mxu0 %vm120_vm0, %v95_v30 }
  0x25   :  { %855 = vmatmul.mubr.msk.bf16.gmra.mrb[12].mxu0 %vm120_vm0, %v96_v33 }
  0xe0   :  { %v844_v35 = vpop.f32.mrb[0].mxu0 }
  0xe1   :  { %v1150_v36 = vadd.f32 %v844_v35, %v752_v34  ;;  %v179_v37 = vpop.f32.mrb[1].mxu0 }
  0xe2   :  { %v180_v38 = vadd.f32 %v752_v34, %v179_v37  ;;  %v845_v39 = vpop.f32.mrb[2].mxu0 }
  0xe3   :  { %v244_v40 = vmax.f32 %v1150_v36, 0.0  ;;  %v191_v41 = vadd.f32 %v845_v39, %v752_v34  ;;  %v182_v42 = vpop.f32.mrb[3].mxu0 }
  0xe4   :  { %v242_v43 = vmax.f32 %v180_v38, 0.0  ;;  %v183_v44 = vadd.f32 %v752_v34, %v182_v42 }
  0xe5   :  { %v1153_v45 = vmul.f32 0.1, %v244_v40  ;;  %v245_v46 = vmax.f32 %v191_v41, 0.0 }
  0xe6   :  { %v1155_v47 = vmul.f32 0.1, %v242_v43  ;;  %v243_v48 = vmax.f32 %v183_v44, 0.0 }
  0xe7   :  { %v1157_v49 = vmul.f32 0.1, %v245_v46 }
  0xe8   :  { %v1159_v50 = vmul.f32 0.1, %v243_v48  ;;  %v848_v51 = vpop.f32.mrb[4].mxu0 }
  0xe9   :  { %v204_v52 = vadd.f32 %v848_v51, %v752_v34  ;;  %v195_v53 = vpop.f32.mrb[5].mxu0 }
  0xea   :  { %v196_v54 = vadd.f32 %v752_v34, %v195_v53  ;;  %v849_v55 = vpop.f32.mrb[6].mxu0  ;;  %v287_v53 = vpack.c.bf16 %v245_v46, %v244_v40 }
  0xeb   :  { %v248_v56 = vmax.f32 %v204_v52, 0.0  ;;  %v207_v57 = vadd.f32 %v849_v55, %v752_v34  ;;  %v198_v58 = vpop.f32.mrb[7].mxu0  ;;  %v286_v52 = vpack.c.bf16 %v243_v48, %v242_v43 }
  0xec   :  { %v246_v59 = vmax.f32 %v196_v54, 0.0  ;;  %v199_v60 = vadd.f32 %v752_v34, %v198_v58 }
  0xed   :  { %v1161_v61 = vmul.f32 0.1, %v248_v56  ;;  %v249_v62 = vmax.f32 %v207_v57, 0.0 }
  0xee   :  { %v1163_v63 = vmul.f32 0.1, %v246_v59  ;;  %v247_v8 = vmax.f32 %v199_v60, 0.0 }
  0xef   :  { %v1165_v9 = vmul.f32 0.1, %v249_v62 }
  0xf0   :  { %v1167_v10 = vmul.f32 0.1, %v247_v8  ;;  %v852_v11 = vpop.f32.mrb[8].mxu0 }
  0xf1   :  { %v220_v12 = vadd.f32 %v852_v11, %v752_v34  ;;  %v211_v13 = vpop.f32.mrb[9].mxu0 }
  0xf2   :  { %v212_v14 = vadd.f32 %v752_v34, %v211_v13  ;;  %v853_v15 = vpop.f32.mrb[10].mxu0 }
  0xf3   :  { %v252_v16 = vmax.f32 %v220_v12, 0.0  ;;  %v223_v17 = vadd.f32 %v853_v15, %v752_v34  ;;  %v214_v18 = vpop.f32.mrb[11].mxu0 }
  0xf4   :  { %v250_v19 = vmax.f32 %v212_v14, 0.0  ;;  %v215_v20 = vadd.f32 %v752_v34, %v214_v18 }
  0xf5   :  { %v1169_v21 = vmul.f32 0.1, %v252_v16  ;;  %v253_v22 = vmax.f32 %v223_v17, 0.0 }
  0xf6   :  { %v1171_v23 = vmul.f32 0.1, %v250_v19  ;;  %v251_v24 = vmax.f32 %v215_v20, 0.0 }
  0xf7   :  { %v1173_v25 = vmul.f32 0.1, %v253_v22 }
  0xf8   :  { %v1175_v26 = vmul.f32 0.1, %v251_v24  ;;  %v856_v27 = vpop.f32.mrb[12].mxu0 }
  0xf9   :  { %v236_v28 = vadd.f32 %v856_v27, %v752_v34  ;;  %v227_v29 = vpop.f32.mrb[13].mxu0 }
  0xfa   :  { %v228_v30 = vadd.f32 %v752_v34, %v227_v29  ;;  %v857_v31 = vpop.f32.mrb[14].mxu0 }
  0xfb   :  { %v256_v32 = vmax.f32 %v236_v28, 0.0  ;;  %v239_v33 = vadd.f32 %v857_v31, %v752_v34  ;;  %v230_v35 = vpop.f32.mrb[15].mxu0 }
  0xfc   :  { %v254_v36 = vmax.f32 %v228_v30, 0.0  ;;  %v231_v37 = vadd.f32 %v752_v34, %v230_v35 }
  0xfd   :  { %v1177_v38 = vmul.f32 0.1, %v256_v32  ;;  %v257_v39 = vmax.f32 %v239_v33, 0.0 }
  0xfe   :  { %v1179_v41 = vmul.f32 0.1, %v254_v36  ;;  %v255_v42 = vmax.f32 %v231_v37, 0.0 }
  0xff   :  { %v1181_v44 = vmul.f32 0.1, %v257_v39 }
 0x100   :  { %v1183_v51 = vmul.f32 0.1, %v255_v42 }
 0x101   :  { %1013 = dma.done.wait [#allocation3], 1024 }
 0x102   :  { %1014 = vsyncadd [#allocation3], 4294966272  ;;  %906 = vmatprep.mubr.bf16.mxu0 %v1048_v0  ;;  %858 = vmatprep.subr.bf16.mxu1 %v286_v52  ;;  %v288_v34 = vpack.c.bf16 %v247_v8, %v246_v59  ;;  %v289_v54 = vpack.c.bf16 %v249_v62, %v248_v56  ;;  %v290_v55 = vpack.c.bf16 %v251_v24, %v250_v19  ;;  %s1017_s1 = smov [#allocation4]  }
 0x103   :  { %859 = vmatpush3.bf16.msra.mxu1 %v286_v52  ;;  %v291_v43 = vpack.c.bf16 %v253_v22, %v252_v16  ;;  %v292_v40 = vpack.c.bf16 %v255_v42, %v254_v36  ;;  %v293_v46 = vpack.c.bf16 %v257_v39, %v256_v32  ;;  %s727_s3 = sshll.u32 %s1017_s1, 4  ;;  %s728_s3 = int_to_ptr.vmem [resolvable:$true] %s727_s3 }
 0x104   :  { %860 = vmatprep.subr.bf16.mxu1 %v287_v53  ;;  %s991_s14 = scalar_lea.vmem %s728_s3, 2048  ;;  %p996_p1 = scmp.lt.s32.totalorder %s728_s3, %s728_s3 }
 0x105   :  { %p992_p0 = scmp.ne.s32.totalorder %s728_s3, %s991_s14  ;;  %p997_p2 = scmp.lt.s32.totalorder %s991_s14, %s991_s14 }
 0x107   :  { %861 = vmatpush3.bf16.msra.mxu1 %v287_v53  ;;  %p998_p3 = por %p997_p2, %p996_p1 }
 0x108   :  { %862 = vmatprep.subr.bf16.mxu1 %v288_v34 }
 0x109   :  { %p999_p4 = pnand %p998_p3, %p992_p0 }
 0x10b   :  { %863 = vmatpush3.bf16.msra.mxu1 %v288_v34 }
 0x10c   :  { %864 = vmatprep.subr.bf16.mxu1 %v289_v54 }
 0x10f   :  { %865 = vmatpush3.bf16.msra.mxu1 %v289_v54 }
 0x110   :  { %866 = vmatprep.subr.bf16.mxu1 %v290_v55 }
 0x113   :  { %867 = vmatpush3.bf16.msra.mxu1 %v290_v55 }
 0x114   :  { %868 = vmatprep.subr.bf16.mxu1 %v291_v43 }
 0x117   :  { %869 = vmatpush3.bf16.msra.mxu1 %v291_v43 }
 0x118   :  { %870 = vmatprep.subr.bf16.mxu1 %v292_v40 }
 0x11b   :  { %871 = vmatpush3.bf16.msra.mxu1 %v292_v40 }
 0x11c   :  { %872 = vmatprep.subr.bf16.mxu1 %v293_v46 }
 0x11f   :  { %873 = vmatpush3.bf16.msra.mxu1 %v293_v46 }
 0x122   :  { %875 = vmatmul.mubr.bf16.vlgmr.msra.gmra.mrb[0].mxu1 %v1053_v1 }
 0x123   :  { %878 = vmatprep.mubr.bf16.mxu1 %v1058_v2 }
 0x12a   :  { %879 = vmatmul.mubr.bf16.gmra.mrb[4].mxu1 %v1063_v3 }
 0x12b   :  { %882 = vmatprep.mubr.bf16.mxu1 %v1068_v4 }
 0x132   :  { %883 = vmatmul.mubr.bf16.gmra.mrb[8].mxu1 %v1073_v5 }
 0x133   :  { %886 = vmatprep.mubr.bf16.mxu1 %v1078_v6 }
 0x13a   :  { %887 = vmatmul.mubr.bf16.gmra.mrb[12].mxu1 %v1083_v7 }
 0x13b   :  { %938 = vmatprep.mubr.bf16.mxu1 %v1048_v0 }
 0x1f5   :  { %v876_v48 = vpop.f32.mrb[0].mxu1 }
 0x1f6   :  { %v328_v56 = vpop.f32.mrb[1].mxu1  ;;  %v337_v58 = vadd.f32 %v876_v48, %v1153_v45 }
 0x1f7   :  { %v877_v57 = vpop.f32.mrb[2].mxu1  ;;  %v329_v62 = vadd.f32 %v328_v56, %v1155_v47 }
 0x1f8   :  { %v340_v59 = vadd.f32 %v877_v57, %v1157_v49  ;;  %v331_v60 = vpop.f32.mrb[3].mxu1 }
 0x1f9   :  { %v332_v8 = vadd.f32 %v331_v60, %v1159_v50 }
 0x1fa   :  { %v392_v11 = vpack.c.bf16 %v340_v59, %v337_v58 }
 0x1fb   :  { %v391_v12 = vpack.c.bf16 %v332_v8, %v329_v62 }
 0x1fd   :  { %v880_v13 = vpop.f32.mrb[4].mxu1  ;;  %890 = vmatprep.subr.bf16.mxu0 %v391_v12 }
 0x1fe   :  { %v344_v14 = vpop.f32.mrb[5].mxu1  ;;  %891 = vmatpush3.bf16.msra.mxu0 %v391_v12  ;;  %v353_v16 = vadd.f32 %v880_v13, %v1161_v61 }
 0x1ff   :  { %v881_v15 = vpop.f32.mrb[6].mxu1  ;;  %892 = vmatprep.subr.bf16.mxu0 %v392_v11  ;;  %v345_v19 = vadd.f32 %v344_v14, %v1163_v63 }
 0x200   :  { %v356_v17 = vadd.f32 %v881_v15, %v1165_v9  ;;  %v347_v18 = vpop.f32.mrb[7].mxu1 }
 0x201   :  { %v348_v20 = vadd.f32 %v347_v18, %v1167_v10 }
 0x202   :  { %v394_v22 = vpack.c.bf16 %v356_v17, %v353_v16  ;;  %893 = vmatpush3.bf16.msra.mxu0 %v392_v11 }
 0x203   :  { %v393_v24 = vpack.c.bf16 %v348_v20, %v345_v19 }
 0x205   :  { %v884_v27 = vpop.f32.mrb[8].mxu1  ;;  %894 = vmatprep.subr.bf16.mxu0 %v393_v24 }
 0x206   :  { %v360_v28 = vpop.f32.mrb[9].mxu1  ;;  %895 = vmatpush3.bf16.msra.mxu0 %v393_v24  ;;  %v369_v30 = vadd.f32 %v884_v27, %v1169_v21 }
 0x207   :  { %v885_v29 = vpop.f32.mrb[10].mxu1  ;;  %896 = vmatprep.subr.bf16.mxu0 %v394_v22  ;;  %v361_v33 = vadd.f32 %v360_v28, %v1171_v23 }
 0x208   :  { %v372_v31 = vadd.f32 %v885_v29, %v1173_v25  ;;  %v363_v32 = vpop.f32.mrb[11].mxu1 }
 0x209   :  { %v364_v35 = vadd.f32 %v363_v32, %v1175_v26 }
 0x20a   :  { %v396_v36 = vpack.c.bf16 %v372_v31, %v369_v30  ;;  %897 = vmatpush3.bf16.msra.mxu0 %v394_v22 }
 0x20b   :  { %v395_v37 = vpack.c.bf16 %v364_v35, %v361_v33 }
 0x20d   :  { %v888_v39 = vpop.f32.mrb[12].mxu1  ;;  %898 = vmatprep.subr.bf16.mxu0 %v395_v37 }
 0x20e   :  { %v376_v42 = vpop.f32.mrb[13].mxu1  ;;  %899 = vmatpush3.bf16.msra.mxu0 %v395_v37  ;;  %v385_v53 = vadd.f32 %v888_v39, %v1177_v38 }
 0x20f   :  { %v889_v52 = vpop.f32.mrb[14].mxu1  ;;  %900 = vmatprep.subr.bf16.mxu0 %v396_v36  ;;  %v377_v55 = vadd.f32 %v376_v42, %v1179_v41 }
 0x210   :  { %v388_v34 = vadd.f32 %v889_v52, %v1181_v44  ;;  %v379_v54 = vpop.f32.mrb[15].mxu1 }
 0x211   :  { %v380_v43 = vadd.f32 %v379_v54, %v1183_v51 }
 0x212   :  { %v398_v40 = vpack.c.bf16 %v388_v34, %v385_v53  ;;  %901 = vmatpush3.bf16.msra.mxu0 %v396_v36 }
 0x213   :  { %v397_v46 = vpack.c.bf16 %v380_v43, %v377_v55 }
 0x215   :  { %902 = vmatprep.subr.bf16.mxu0 %v397_v46 }
 0x216   :  { %903 = vmatpush3.bf16.msra.mxu0 %v397_v46 }
 0x217   :  { %904 = vmatprep.subr.bf16.mxu0 %v398_v40 }
 0x21a   :  { %905 = vmatpush3.bf16.msra.mxu0 %v398_v40 }
 0x21d   :  { %907 = vmatmul.mubr.bf16.vlgmr.msra.gmra.mrb[16].mxu0 %v1053_v1 }
 0x21e   :  { %910 = vmatprep.mubr.bf16.mxu0 %v1058_v2 }
 0x225   :  { %911 = vmatmul.mubr.bf16.gmra.mrb[20].mxu0 %v1063_v3 }
 0x226   :  { %914 = vmatprep.mubr.bf16.mxu0 %v1068_v4 }
 0x22d   :  { %915 = vmatmul.mubr.bf16.gmra.mrb[24].mxu0 %v1073_v5 }
 0x22e   :  { %918 = vmatprep.mubr.bf16.mxu0 %v1078_v6 }
 0x235   :  { %919 = vmatmul.mubr.bf16.gmra.mrb[28].mxu0 %v1083_v7 }
 0x236   :  { %970 = vmatprep.mubr.bf16.mxu0 %v1048_v0 }
 0x2f0   :  { %v908_v48 = vpop.f32.mrb[16].mxu0 }
 0x2f1   :  { %v433_v56 = vpop.f32.mrb[17].mxu0  ;;  %v442_v58 = vadd.f32 %v908_v48, %v1153_v45 }
 0x2f2   :  { %v909_v57 = vpop.f32.mrb[18].mxu0  ;;  %v434_v62 = vadd.f32 %v433_v56, %v1155_v47 }
 0x2f3   :  { %v445_v59 = vadd.f32 %v909_v57, %v1157_v49  ;;  %v436_v60 = vpop.f32.mrb[19].mxu0 }
 0x2f4   :  { %v437_v8 = vadd.f32 %v436_v60, %v1159_v50 }
 0x2f5   :  { %v497_v11 = vpack.c.bf16 %v445_v59, %v442_v58 }
 0x2f6   :  { %v496_v12 = vpack.c.bf16 %v437_v8, %v434_v62 }
 0x2f8   :  { %v912_v13 = vpop.f32.mrb[20].mxu0  ;;  %922 = vmatprep.subr.bf16.mxu1 %v496_v12 }
 0x2f9   :  { %v449_v14 = vpop.f32.mrb[21].mxu0  ;;  %923 = vmatpush3.bf16.msra.mxu1 %v496_v12  ;;  %v458_v0 = vadd.f32 %v912_v13, %v1161_v61 }
 0x2fa   :  { %v913_v15 = vpop.f32.mrb[22].mxu0  ;;  %924 = vmatprep.subr.bf16.mxu1 %v497_v11  ;;  %v450_v18 = vadd.f32 %v449_v14, %v1163_v63 }
 0x2fb   :  { %v461_v16 = vadd.f32 %v913_v15, %v1165_v9  ;;  %v452_v17 = vpop.f32.mrb[23].mxu0 }
 0x2fc   :  { %v453_v19 = vadd.f32 %v452_v17, %v1167_v10 }
 0x2fd   :  { %v499_v20 = vpack.c.bf16 %v461_v16, %v458_v0  ;;  %925 = vmatpush3.bf16.msra.mxu1 %v497_v11 }
 0x2fe   :  { %v498_v22 = vpack.c.bf16 %v453_v19, %v450_v18 }
 0x300   :  { %v916_v24 = vpop.f32.mrb[24].mxu0  ;;  %926 = vmatprep.subr.bf16.mxu1 %v498_v22 }
 0x301   :  { %v465_v27 = vpop.f32.mrb[25].mxu0  ;;  %927 = vmatpush3.bf16.msra.mxu1 %v498_v22  ;;  %v474_v29 = vadd.f32 %v916_v24, %v1169_v21 }
 0x302   :  { %v917_v28 = vpop.f32.mrb[26].mxu0  ;;  %928 = vmatprep.subr.bf16.mxu1 %v499_v20  ;;  %v466_v32 = vadd.f32 %v465_v27, %v1171_v23 }
 0x303   :  { %v477_v30 = vadd.f32 %v917_v28, %v1173_v25  ;;  %v468_v31 = vpop.f32.mrb[27].mxu0 }
 0x304   :  { %v469_v33 = vadd.f32 %v468_v31, %v1175_v26 }
 0x305   :  { %v501_v35 = vpack.c.bf16 %v477_v30, %v474_v29  ;;  %929 = vmatpush3.bf16.msra.mxu1 %v499_v20 }
 0x306   :  { %v500_v36 = vpack.c.bf16 %v469_v33, %v466_v32 }
 0x308   :  { %v920_v37 = vpop.f32.mrb[28].mxu0  ;;  %930 = vmatprep.subr.bf16.mxu1 %v500_v36 }
 0x309   :  { %v481_v39 = vpop.f32.mrb[29].mxu0  ;;  %931 = vmatpush3.bf16.msra.mxu1 %v500_v36  ;;  %v490_v52 = vadd.f32 %v920_v37, %v1177_v38 }
 0x30a   :  { %v921_v42 = vpop.f32.mrb[30].mxu0  ;;  %932 = vmatprep.subr.bf16.mxu1 %v501_v35  ;;  %v482_v54 = vadd.f32 %v481_v39, %v1179_v41 }
 0x30b   :  { %v493_v53 = vadd.f32 %v921_v42, %v1181_v44  ;;  %v484_v34 = vpop.f32.mrb[31].mxu0 }
 0x30c   :  { %v485_v55 = vadd.f32 %v484_v34, %v1183_v51 }
 0x30d   :  { %v503_v43 = vpack.c.bf16 %v493_v53, %v490_v52  ;;  %933 = vmatpush3.bf16.msra.mxu1 %v501_v35 }
 0x30e   :  { %v502_v40 = vpack.c.bf16 %v485_v55, %v482_v54 }
 0x310   :  { %934 = vmatprep.subr.bf16.mxu1 %v502_v40 }
 0x311   :  { %935 = vmatpush3.bf16.msra.mxu1 %v502_v40 }
 0x312   :  { %936 = vmatprep.subr.bf16.mxu1 %v503_v43 }
 0x315   :  { %937 = vmatpush3.bf16.msra.mxu1 %v503_v43 }
 0x318   :  { %939 = vmatmul.mubr.bf16.vlgmr.msra.gmra.mrb[16].mxu1 %v1053_v1 }
 0x319   :  { %942 = vmatprep.mubr.bf16.mxu1 %v1058_v2 }
 0x320   :  { %943 = vmatmul.mubr.bf16.gmra.mrb[20].mxu1 %v1063_v3 }
 0x321   :  { %946 = vmatprep.mubr.bf16.mxu1 %v1068_v4 }
 0x328   :  { %947 = vmatmul.mubr.bf16.gmra.mrb[24].mxu1 %v1073_v5 }
 0x329   :  { %950 = vmatprep.mubr.bf16.mxu1 %v1078_v6 }
 0x330   :  { %951 = vmatmul.mubr.bf16.gmra.mrb[28].mxu1 %v1083_v7 }
 0x3eb   :  { %v940_v46 = vpop.f32.mrb[16].mxu1 }
 0x3ec   :  { %v538_v48 = vpop.f32.mrb[17].mxu1  ;;  %v547_v57 = vadd.f32 %v940_v46, %v1153_v45 }
 0x3ed   :  { %v941_v56 = vpop.f32.mrb[18].mxu1  ;;  %v539_v60 = vadd.f32 %v538_v48, %v1155_v47 }
 0x3ee   :  { %v550_v58 = vadd.f32 %v941_v56, %v1157_v49  ;;  %v541_v59 = vpop.f32.mrb[19].mxu1 }
 0x3ef   :  { %v542_v62 = vadd.f32 %v541_v59, %v1159_v50 }
 0x3f0   :  { %v602_v8 = vpack.c.bf16 %v550_v58, %v547_v57 }
 0x3f1   :  { %v601_v11 = vpack.c.bf16 %v542_v62, %v539_v60 }
 0x3f3   :  { %v944_v12 = vpop.f32.mrb[20].mxu1  ;;  %954 = vmatprep.subr.bf16.mxu0 %v601_v11 }
 0x3f4   :  { %v554_v13 = vpop.f32.mrb[21].mxu1  ;;  %955 = vmatpush3.bf16.msra.mxu0 %v601_v11  ;;  %v563_v15 = vadd.f32 %v944_v12, %v1161_v61 }
 0x3f5   :  { %v945_v14 = vpop.f32.mrb[22].mxu1  ;;  %956 = vmatprep.subr.bf16.mxu0 %v602_v8  ;;  %v555_v17 = vadd.f32 %v554_v13, %v1163_v63 }
 0x3f6   :  { %v566_v0 = vadd.f32 %v945_v14, %v1165_v9  ;;  %v557_v16 = vpop.f32.mrb[23].mxu1 }
 0x3f7   :  { %v558_v18 = vadd.f32 %v557_v16, %v1167_v10 }
 0x3f8   :  { %v604_v19 = vpack.c.bf16 %v566_v0, %v563_v15  ;;  %957 = vmatpush3.bf16.msra.mxu0 %v602_v8 }
 0x3f9   :  { %v603_v20 = vpack.c.bf16 %v558_v18, %v555_v17 }
 0x3fb   :  { %v948_v22 = vpop.f32.mrb[24].mxu1  ;;  %958 = vmatprep.subr.bf16.mxu0 %v603_v20 }
 0x3fc   :  { %v570_v24 = vpop.f32.mrb[25].mxu1  ;;  %959 = vmatpush3.bf16.msra.mxu0 %v603_v20  ;;  %v579_v28 = vadd.f32 %v948_v22, %v1169_v21 }
 0x3fd   :  { %v949_v27 = vpop.f32.mrb[26].mxu1  ;;  %960 = vmatprep.subr.bf16.mxu0 %v604_v19  ;;  %v571_v31 = vadd.f32 %v570_v24, %v1171_v23 }
 0x3fe   :  { %v582_v29 = vadd.f32 %v949_v27, %v1173_v25  ;;  %v573_v30 = vpop.f32.mrb[27].mxu1 }
 0x3ff   :  { %v574_v32 = vadd.f32 %v573_v30, %v1175_v26 }
 0x400   :  { %v606_v33 = vpack.c.bf16 %v582_v29, %v579_v28  ;;  %961 = vmatpush3.bf16.msra.mxu0 %v604_v19 }
 0x401   :  { %v605_v35 = vpack.c.bf16 %v574_v32, %v571_v31 }
 0x403   :  { %v952_v36 = vpop.f32.mrb[28].mxu1  ;;  %962 = vmatprep.subr.bf16.mxu0 %v605_v35 }
 0x404   :  { %v586_v37 = vpop.f32.mrb[29].mxu1  ;;  %963 = vmatpush3.bf16.msra.mxu0 %v605_v35  ;;  %v595_v42 = vadd.f32 %v952_v36, %v1177_v38 }
 0x405   :  { %v953_v39 = vpop.f32.mrb[30].mxu1  ;;  %964 = vmatprep.subr.bf16.mxu0 %v606_v33  ;;  %v587_v34 = vadd.f32 %v586_v37, %v1179_v41 }
 0x406   :  { %v598_v52 = vadd.f32 %v953_v39, %v1181_v44  ;;  %v589_v53 = vpop.f32.mrb[31].mxu1 }
 0x407   :  { %v590_v54 = vadd.f32 %v589_v53, %v1183_v51 }
 0x408   :  { %v608_v55 = vpack.c.bf16 %v598_v52, %v595_v42  ;;  %965 = vmatpush3.bf16.msra.mxu0 %v606_v33 }
 0x409   :  { %v607_v43 = vpack.c.bf16 %v590_v54, %v587_v34 }
 0x40b   :  { %966 = vmatprep.subr.bf16.mxu0 %v607_v43 }
 0x40c   :  { %967 = vmatpush3.bf16.msra.mxu0 %v607_v43 }
 0x40d   :  { %968 = vmatprep.subr.bf16.mxu0 %v608_v55 }
 0x410   :  { %969 = vmatpush3.bf16.msra.mxu0 %v608_v55 }
 0x413   :  { %971 = vmatmul.mubr.bf16.vlgmr.msra.gmra.mrb[32].mxu0 %v1053_v1 }
 0x414   :  { %974 = vmatprep.mubr.bf16.mxu0 %v1058_v2 }
 0x41b   :  { %975 = vmatmul.mubr.bf16.gmra.mrb[36].mxu0 %v1063_v3 }
 0x41c   :  { %978 = vmatprep.mubr.bf16.mxu0 %v1068_v4 }
 0x423   :  { %979 = vmatmul.mubr.bf16.gmra.mrb[40].mxu0 %v1073_v5 }
 0x424   :  { %982 = vmatprep.mubr.bf16.mxu0 %v1078_v6 }
 0x42b   :  { %983 = vmatmul.mubr.bf16.gmra.mrb[44].mxu0 %v1083_v7 }
 0x4e6   :  { %v972_v40 = vpop.f32.mrb[32].mxu0 }
 0x4e7   :  { %v652_v46 = vadd.f32 %v972_v40, %v1153_v45  ;;  %v643_v48 = vpop.f32.mrb[33].mxu0 }
 0x4e8   :  { %v644_v56 = vadd.f32 %v643_v48, %v1155_v47  ;;  %v973_v57 = vpop.f32.mrb[34].mxu0 }
 0x4e9   :  { %v655_v1 = vadd.f32 %v973_v57, %v1157_v49  ;;  %708 = vst [vmem:[#allocation4 + $0x10] sm:$0xff] %v652_v46  ;;  %v646_v2 = vpop.f32.mrb[35].mxu0 }
 0x4ea   :  { %706 = vst [vmem:[#allocation4] sm:$0xff] %v644_v56  ;;  %v647_v3 = vadd.f32 %v646_v2, %v1159_v50 }
 0x4eb   :  { %709 = vst [vmem:[#allocation4 + $0x18] sm:$0xff] %v655_v1 }
 0x4ec   :  { %707 = vst [vmem:[#allocation4 + $0x8] sm:$0xff] %v647_v3 }
 0x4ee   :  { %v976_v4 = vpop.f32.mrb[36].mxu0 }
 0x4ef   :  { %v668_v5 = vadd.f32 %v976_v4, %v1161_v61  ;;  %v659_v6 = vpop.f32.mrb[37].mxu0 }
 0x4f0   :  { %v660_v7 = vadd.f32 %v659_v6, %v1163_v63  ;;  %v977_v45 = vpop.f32.mrb[38].mxu0 }
 0x4f1   :  { %712 = vst [vmem:[#allocation4 + $0x30] sm:$0xff] %v668_v5  ;;  %v671_v47 = vadd.f32 %v977_v45, %v1165_v9  ;;  %v662_v58 = vpop.f32.mrb[39].mxu0 }
 0x4f2   :  { %710 = vst [vmem:[#allocation4 + $0x20] sm:$0xff] %v660_v7  ;;  %v663_v49 = vadd.f32 %v662_v58, %v1167_v10 }
 0x4f3   :  { %713 = vst [vmem:[#allocation4 + $0x38] sm:$0xff] %v671_v47 }
 0x4f4   :  { %711 = vst [vmem:[#allocation4 + $0x28] sm:$0xff] %v663_v49 }
 0x4f6   :  { %v980_v59 = vpop.f32.mrb[40].mxu0 }
 0x4f7   :  { %v684_v50 = vadd.f32 %v980_v59, %v1169_v21  ;;  %v675_v60 = vpop.f32.mrb[41].mxu0 }
 0x4f8   :  { %v676_v62 = vadd.f32 %v675_v60, %v1171_v23  ;;  %v981_v61 = vpop.f32.mrb[42].mxu0 }
 0x4f9   :  { %716 = vst [vmem:[#allocation4 + $0x50] sm:$0xff] %v684_v50  ;;  %v687_v63 = vadd.f32 %v981_v61, %v1173_v25  ;;  %v678_v8 = vpop.f32.mrb[43].mxu0 }
 0x4fa   :  { %714 = vst [vmem:[#allocation4 + $0x40] sm:$0xff] %v676_v62  ;;  %v679_v9 = vadd.f32 %v678_v8, %v1175_v26 }
 0x4fb   :  { %717 = vst [vmem:[#allocation4 + $0x58] sm:$0xff] %v687_v63 }
 0x4fc   :  { %715 = vst [vmem:[#allocation4 + $0x48] sm:$0xff] %v679_v9 }
 0x4fe   :  { %v984_v11 = vpop.f32.mrb[44].mxu0 }
 0x4ff   :  { %v700_v10 = vadd.f32 %v984_v11, %v1177_v38  ;;  %v691_v12 = vpop.f32.mrb[45].mxu0 }
 0x500   :  { %v692_v21 = vadd.f32 %v691_v12, %v1179_v41  ;;  %v985_v13 = vpop.f32.mrb[46].mxu0 }
 0x501   :  { %720 = vst [vmem:[#allocation4 + $0x70] sm:$0xff] %v700_v10  ;;  %v703_v23 = vadd.f32 %v985_v13, %v1181_v44  ;;  %v694_v14 = vpop.f32.mrb[47].mxu0 }
 0x502   :  { %718 = vst [vmem:[#allocation4 + $0x60] sm:$0xff] %v692_v21  ;;  %v695_v25 = vadd.f32 %v694_v14, %v1183_v51 }
 0x503   :  { %721 = vst [vmem:[#allocation4 + $0x78] sm:$0xff] %v703_v23 }
 0x504   :  { %719 = vst [vmem:[#allocation4 + $0x68] sm:$0xff] %v695_v25 }
 0x505   :  { %1002 = shalt.err (!%p999_p4)
}
 0x506   :  { %s1003_s16 = scalar_lea.hbm %s1297_s4, 2048 }
 0x507   :  { %p1004_p5 = scmp.ne.s32.totalorder %s1297_s4, %s1003_s16  ;;  %p1007_p6 = scmp.lt.u32.totalorder %s1003_s16, %s1297_s4 }
 0x509   :  { %p1009_p7 = pnand %p1007_p6, %p1004_p5 }
 0x50b   :  { %1012 = shalt.err (!%p1009_p7)
}
 0x50c   :  { %s1018_s21 = smov 128   ;;  %s1019_s22 = smov 8  }
 0x50d   :  { %733 = dma.vmem_to_hbm [thread:$0]  %s728_s3, 2048, %s1297_s4, [#allocation5], %s1018_s21, %s1018_s21, %s1019_s22  }
 0x50e   :  { %1015 = dma.done.wait [#allocation5], 2048  }
 0x50f   :  { %1016 = vsyncadd [#allocation5], 4294965248 }
 0x510   :  { %737 = vsyncpa [#allocation5], 1 }
 0x511   :  { %738 = vsyncmov [#allocation3] }
 0x514   :  { %s739_s25 = vpop.sfrf %738 }
 0x515   :  { %p763_p8 = scmp.ne.s32.totalorder %s739_s25, 0 }
 0x517   :  { %743 = shalt.err (%p763_p8)  }

</bundles_post_ra>
